<compile_context>
chip_gen: v7x
topology: tpu7x:2x2x1
jax: 0.10.0
libtpu: 0.0.40
codegen_flags: <defaults>
</compile_context>

<pallas_src>
import functools

import jax
import jax.numpy as jnp
from jax.experimental import pallas as pl
from jax.experimental.pallas import tpu as pltpu

LANES = 128
SUBLANES = 8


def _charbonnier_sum_kernel(pred_ref, gt_ref, partial_ref, *,
                            eps2, chunk_rows, n_chunks, inner_steps,
                            total_blocks, tail_residual, needs_mask,
                            has_phantom, align):
    s = pl.program_id(0)          # split axis ("parallel", megacore on v7x)
    i = pl.program_id(1)          # reduction axis ("arbitrary")
    block_idx = s * inner_steps + i

    @pl.when(i == 0)
    def _init():
        # Output block is VMEM-resident across the reduction axis; it doubles
        # as the accumulator.
        partial_ref[...] = jnp.zeros_like(partial_ref)

    def _block_sum(masked):
        # Chunked elementwise + partial reduce: per-chunk temporaries stay in
        # vregs; the running (8,128) f32 accumulator is a single-vreg carry.
        def body(c, acc):
            r0 = pl.multiple_of(c * chunk_rows, align)
            p = pred_ref[pl.ds(r0, chunk_rows), :].astype(jnp.float32)
            g = gt_ref[pl.ds(r0, chunk_rows), :].astype(jnp.float32)
            d = p - g
            v = jnp.sqrt(d * d + jnp.float32(eps2))
            if masked:
                # Local (block-relative) flat index vs. static residual:
                # no global-index multiply, no int32 overflow for huge tensors.
                row_ids = jax.lax.broadcasted_iota(jnp.int32, (chunk_rows, LANES), 0)
                lane_ids = jax.lax.broadcasted_iota(jnp.int32, (chunk_rows, LANES), 1)
                lidx = (r0 + row_ids) * LANES + lane_ids
                v = jnp.where(lidx < tail_residual, v, jnp.float32(0.0))
            return acc + v.reshape(chunk_rows // SUBLANES, SUBLANES, LANES).sum(axis=0)

        return jax.lax.fori_loop(0, n_chunks, body,
                                 jnp.zeros((SUBLANES, LANES), jnp.float32))

    is_last = block_idx == (total_blocks - 1)

    if needs_mask:
        if has_phantom:
            full_cond = jnp.logical_and(block_idx < total_blocks,
                                        jnp.logical_not(is_last))
        else:
            full_cond = jnp.logical_not(is_last)

        @pl.when(full_cond)
        def _full():
            partial_ref[...] += _block_sum(False)

        @pl.when(is_last)
        def _tail():
            partial_ref[...] += _block_sum(True)
    else:
        if has_phantom:
            @pl.when(block_idx < total_blocks)
            def _full():
                partial_ref[...] += _block_sum(False)
        else:
            partial_ref[...] += _block_sum(False)


def _default_block_rows(itemsize):
    """Pick ~4 MiB/input tiles (8 MiB when VMEM capacity allows)."""
    try:
        info = pltpu.get_tpu_info()
        cap = getattr(info, "vmem_capacity_bytes", 64 << 20)
    except Exception:
        cap = 64 << 20            # conservative: v7x per-TC VMEM
    tile_bytes = (8 << 20) if cap >= (100 << 20) else (4 << 20)
    return max(SUBLANES, tile_bytes // (LANES * itemsize))


def charbonnier_loss(output, gt, epsilon=0.001, block_rows=None,
                     chunk_rows=256, max_splits=2):
    assert output.shape == gt.shape, "output / gt must have identical shapes"
    n_elems = output.size
    eps2 = float(epsilon) ** 2
    itemsize = output.dtype.itemsize
    # Sublane packing of the input dtype: 8 (f32), 16 (bf16), 32 (int8/fp8).
    pack = max(SUBLANES, 32 // itemsize)

    pred = output.reshape(-1)
    targ = gt.reshape(-1)

    # Pad only up to a multiple of pack*LANES (free when already a multiple);
    # padded elements are masked out in-kernel on the last block.
    n_lane = pl.cdiv(n_elems, pack * LANES) * (pack * LANES)
    if n_lane != n_elems:
        pred = jnp.pad(pred, (0, n_lane - n_elems))
        targ = jnp.pad(targ, (0, n_lane - n_elems))
    rows = n_lane // LANES

    if block_rows is None:
        block_rows = _default_block_rows(itemsize)
    block_rows = min(block_rows, rows)
    block_rows = max(pack, (block_rows // pack) * pack)

    chunk_rows = min(chunk_rows, block_rows)
    chunk_rows = max(pack, (chunk_rows // pack) * pack)
    if block_rows % chunk_rows:
        block_rows = (block_rows // chunk_rows) * chunk_rows
    n_chunks = block_rows // chunk_rows
    align = chunk_rows & -chunk_rows          # largest power-of-2 divisor

    total_blocks = pl.cdiv(rows, block_rows)
    needs_mask = (total_blocks * block_rows * LANES) != n_elems
    # Residual valid elements in the last block (always fits int32).
    tail_residual = n_elems - (total_blocks - 1) * block_rows * LANES

    # Keep the 2-way split (v7x megacore) even when total_blocks is odd:
    # the phantom grid step is clamped in the index_map and skipped in-kernel.
    if max_splits > 1 and total_blocks >= max_splits:
        n_split = max_splits
        inner_steps = pl.cdiv(total_blocks, n_split)
    else:
        n_split = 1
        inner_steps = total_blocks
    has_phantom = (n_split * inner_steps) != total_blocks

    pred2d = pred.reshape(rows, LANES)
    targ2d = targ.reshape(rows, LANES)

    if has_phantom:
        def in_map(s, i):
            return (jnp.minimum(s * inner_steps + i, total_blocks - 1), 0)
    else:
        def in_map(s, i):
            return (s * inner_steps + i, 0)

    kernel = functools.partial(
        _charbonnier_sum_kernel, eps2=eps2, chunk_rows=chunk_rows,
        n_chunks=n_chunks, inner_steps=inner_steps, total_blocks=total_blocks,
        tail_residual=tail_residual, needs_mask=needs_mask,
        has_phantom=has_phantom, align=align)

    # 2 inputs x 2 pipeline buffers + headroom for temporaries / partials.
    buf_bytes = 2 * 2 * block_rows * LANES * itemsize
    vmem_limit = max(32 << 20, buf_bytes + (8 << 20))

    cost = pl.CostEstimate(
        flops=5 * n_elems,
        transcendentals=n_elems,
        bytes_accessed=2 * rows * LANES * itemsize + n_split * SUBLANES * LANES * 4)

    partials = pl.pallas_call(
        kernel,
        out_shape=jax.ShapeDtypeStruct((n_split * SUBLANES, LANES), jnp.float32),
        grid_spec=pltpu.PrefetchScalarGridSpec(
            num_scalar_prefetch=0,
            grid=(n_split, inner_steps),
            in_specs=[
                pl.BlockSpec((block_rows, LANES), in_map),
                pl.BlockSpec((block_rows, LANES), in_map),
            ],
            out_specs=pl.BlockSpec((SUBLANES, LANES), lambda s, i: (s, 0)),
        ),
        compiler_params=pltpu.CompilerParams(
            dimension_semantics=("parallel", "arbitrary"),
            vmem_limit_bytes=int(vmem_limit)),
        cost_estimate=cost,
    )(pred2d, targ2d)

    # Tiny final cross-lane reduce (n_split*8 x 128) + mean normalization.
    return jnp.sum(partials) / jnp.float32(n_elems)


def charbonnier_loss_ref(output, gt, epsilon=0.001):
    d = output.astype(jnp.float32) - gt.astype(jnp.float32)
    return jnp.mean(jnp.sqrt(d * d + jnp.float32(epsilon) ** 2))


if __name__ == "__main__":
    key = jax.random.PRNGKey(0)

    # 1) Main case: NCHW like the PyTorch module's typical inputs.
    k1, k2 = jax.random.split(key)
    output = jax.random.normal(k1, (2, 4, 16, 16), dtype=jnp.float32)
    gt = jax.random.normal(k2, (2, 4, 16, 16), dtype=jnp.float32)
    loss = jax.block_until_ready(charbonnier_loss(output, gt, epsilon=0.001))
    ref = charbonnier_loss_ref(output, gt, epsilon=0.001)
    assert jnp.allclose(loss, ref, rtol=1e-5, atol=1e-6), (loss, ref)

    # 2) Ragged size: exercises the lane-pad + tail-mask path.
    k3, k4 = jax.random.split(k1)
    o2 = jax.random.normal(k3, (2, 3, 17, 19), dtype=jnp.float32)
    g2 = jax.random.normal(k4, (2, 3, 17, 19), dtype=jnp.float32)
    l2 = jax.block_until_ready(charbonnier_loss(o2, g2, epsilon=0.001))
    r2 = charbonnier_loss_ref(o2, g2, epsilon=0.001)
    assert jnp.allclose(l2, r2, rtol=1e-5, atol=1e-6), (l2, r2)

    # 3) Forced multi-block + 2-way split with a phantom block (clamped
    #    index_map + skip), at a small size.
    k5, k6 = jax.random.split(k2)
    o3 = jax.random.normal(k5, (2, 12, 8, 16), dtype=jnp.float32)   # 3072 elems
    g3 = jax.random.normal(k6, (2, 12, 8, 16), dtype=jnp.float32)
    l3 = jax.block_until_ready(charbonnier_loss(o3, g3, epsilon=0.001, block_rows=8))
    r3 = charbonnier_loss_ref(o3, g3, epsilon=0.001)
    assert jnp.allclose(l3, r3, rtol=1e-5, atol=1e-6), (l3, r3)

    print("KERNEL_OK")
</pallas_src>

<mosaic_0001>
module attributes {stable_mosaic.version = 11 : i64} {
  func.func @_charbonnier_sum_kernel(%arg0: i32, %arg1: i32, %arg2: memref<16x128xf32, #tpu.memory_space<vmem>>, %arg3: memref<16x128xf32, #tpu.memory_space<vmem>>, %arg4: memref<8x128xf32, #tpu.memory_space<vmem>>) attributes {dimension_semantics = [#tpu.dimension_semantics<parallel>, #tpu.dimension_semantics<arbitrary>], iteration_bounds = array<i64: 1, 1>, scalar_prefetch = 0 : i64, scratch_operands = 0 : i64, tpu.core_type = #tpu.core_type<tc>, window_params = [{transform_indices = @transform_0, window_bounds = array<i64: 16, 128>}, {transform_indices = @transform_1, window_bounds = array<i64: 16, 128>}, {transform_indices = @transform_2, window_bounds = array<i64: 8, 128>}]} {
    %c0_i32 = arith.constant 0 : i32
    %0 = arith.cmpi eq, %arg1, %c0_i32 : i32
    %1 = arith.extui %0 : i1 to i32
    %c0_i32_0 = arith.constant 0 : i32
    %2 = arith.cmpi ne, %1, %c0_i32_0 : i32
    scf.if %2 {
      %cst_9 = arith.constant 0.000000e+00 : f32
      %21 = vector.broadcast %cst_9 : f32 to vector<8x128xf32>
      %c0_10 = arith.constant 0 : index
      %c0_11 = arith.constant 0 : index
      %22 = vector.load %arg4[%c0_10, %c0_11] : memref<8x128xf32, #tpu.memory_space<vmem>>, vector<8x128xf32>
      tpu.vector_store %arg4[%c0_10, %c0_11], %21 {strides = array<i32>} : memref<8x128xf32, #tpu.memory_space<vmem>>, vector<8x128xf32>,
    } else {
    }
    %c0 = arith.constant 0 : index
    %c0_1 = arith.constant 0 : index
    %3 = vector.load %arg4[%c0, %c0_1] : memref<8x128xf32, #tpu.memory_space<vmem>>, vector<8x128xf32>
    %cst = arith.constant 0.000000e+00 : f32
    %4 = vector.broadcast %cst : f32 to vector<8x128xf32>
    %c0_i32_2 = arith.constant 0 : i32
    %c16_i32 = arith.constant 16 : i32
    %5 = arith.muli %c0_i32_2, %c16_i32 : i32
    %6 = tpu.assume_multiple %5, 16 : i32
    %7 = arith.index_cast %6 : i32 to index
    %c0_3 = arith.constant 0 : index
    %8 = vector.load %arg2[%7, %c0_3] : memref<16x128xf32, #tpu.memory_space<vmem>>, vector<16x128xf32>
    %9 = arith.index_cast %6 : i32 to index
    %c0_4 = arith.constant 0 : index
    %10 = vector.load %arg3[%9, %c0_4] : memref<16x128xf32, #tpu.memory_space<vmem>>, vector<16x128xf32>
    %11 = arith.subf %8, %10 : vector<16x128xf32>
    %12 = arith.mulf %11, %11 : vector<16x128xf32>
    %cst_5 = arith.constant 9.99999997E-7 : f32
    %13 = vector.broadcast %cst_5 : f32 to vector<16x128xf32>
    %14 = arith.addf %12, %13 : vector<16x128xf32>
    %15 = math.sqrt %14 : vector<16x128xf32>
    %16 = vector.shape_cast %15 : vector<16x128xf32> to vector<2x8x128xf32>
    %cst_6 = arith.constant dense<0.000000e+00> : vector<8x128xf32>
    %17 = vector.multi_reduction <add>, %16, %cst_6 [0] : vector<2x8x128xf32> to vector<8x128xf32>
    %18 = arith.addf %4, %17 : vector<8x128xf32>
    %c1_i32 = arith.constant 1 : i32
    %19 = arith.addf %3, %18 : vector<8x128xf32>
    %c0_7 = arith.constant 0 : index
    %c0_8 = arith.constant 0 : index
    %20 = vector.load %arg4[%c0_7, %c0_8] : memref<8x128xf32, #tpu.memory_space<vmem>>, vector<8x128xf32>
    tpu.vector_store %arg4[%c0_7, %c0_8], %19 {strides = array<i32>} : memref<8x128xf32, #tpu.memory_space<vmem>>, vector<8x128xf32>,
    return
  }
  func.func @transform_0(%arg0: i32, %arg1: i32) -> (i32, i32) {
    %c1_i32 = arith.constant 1 : i32
    %0 = arith.muli %arg0, %c1_i32 : i32
    %1 = arith.addi %0, %arg1 : i32
    %c0_i32 = arith.constant 0 : i32
    %c0_i32_0 = arith.constant 0 : i32
    return %1, %c0_i32 : i32, i32
  }
  func.func @transform_1(%arg0: i32, %arg1: i32) -> (i32, i32) {
    %c1_i32 = arith.constant 1 : i32
    %0 = arith.muli %arg0, %c1_i32 : i32
    %1 = arith.addi %0, %arg1 : i32
    %c0_i32 = arith.constant 0 : i32
    %c0_i32_0 = arith.constant 0 : i32
    return %1, %c0_i32 : i32, i32
  }
  func.func @transform_2(%arg0: i32, %arg1: i32) -> (i32, i32) {
    %c0_i32 = arith.constant 0 : i32
    %c0_i32_0 = arith.constant 0 : i32
    return %arg0, %c0_i32 : i32, i32
  }
}

</mosaic_0001>

<bundles_post_ra>
// kernel: tpu_custom_call.1
= control target key start
LH: loop header
LB: loop body
LE: loop exit
PB: predicated region body
PF: predicated region fallthrough
CT: control target
= control target key end

     0   :  { %7 = vsyncpa [#allocation3], 0  ;;  %s240_s0 = inlined_call_operand.hbm [shape: f32[16,128], index: 0, kind: input, shape index: {}]   ;;  %s241_s1 = inlined_call_operand.hbm [shape: f32[16,128], index: 1, kind: input, shape index: {}]   ;;  %s242_s2 = inlined_call_operand.hbm [shape: f32[8,128], index: 2, kind: output, shape index: {}]  }
   0x1   :  { %8 = vsyncpa [#allocation6], 0 }
   0x2   :  { %9 = vsyncpa [#allocation4], 0  ;;  %s184_s9 = smov [#allocation2]   ;;  %s112_s13 = scalar_lea.hbm %s240_s0, 256 }
   0x3   :  { %s19_s10 = sshll.u32 %s184_s9, 4  ;;  %p113_p0 = scmp.ne.s32.totalorder %s240_s0, %s112_s13  ;;  %s20_s10 = int_to_ptr.vmem [resolvable:$true] %s19_s10 }
   0x4   :  { %p116_p1 = scmp.lt.u32.totalorder %s112_s13, %s240_s0 }
   0x6   :  { %p118_p2 = pnand %p116_p1, %p113_p0 }
   0x8   :  { %121 = shalt.err (!%p118_p2)
}
   0x9   :  { %s122_s18 = scalar_lea.vmem %s20_s10, 256  ;;  %p127_p4 = scmp.lt.s32.totalorder %s20_s10, %s20_s10 }
   0xa   :  { %p123_p3 = scmp.ne.s32.totalorder %s20_s10, %s122_s18  ;;  %p128_p5 = scmp.lt.s32.totalorder %s122_s18, %s122_s18 }
   0xc   :  { %p129_p6 = por %p128_p5, %p127_p4 }
   0xe   :  { %p130_p7 = pnand %p129_p6, %p123_p3 }
  0x10   :  { %133 = shalt.err (!%p130_p7)
}
  0x11   :  { %s185_s19 = smov 128   ;;  %s186_s20 = smov 8  }
  0x12   :  { %25 = dma.hbm_to_vmem [thread:$0]  %s240_s0, 256, %s20_s10, [#allocation3], %s185_s19, %s185_s19, %s186_s20  }
  0x13   :  { %s187_s23 = smov [#allocation5]   ;;  %s134_s27 = scalar_lea.hbm %s241_s1, 256 }
  0x14   :  { %s35_s24 = sshll.u32 %s187_s23, 4  ;;  %p135_p8 = scmp.ne.s32.totalorder %s241_s1, %s134_s27  ;;  %s36_s24 = int_to_ptr.vmem [resolvable:$true] %s35_s24 }
  0x15   :  { %p138_p9 = scmp.lt.u32.totalorder %s134_s27, %s241_s1 }
  0x17   :  { %p140_p10 = pnand %p138_p9, %p135_p8 }
  0x19   :  { %143 = shalt.err (!%p140_p10)
}
  0x1a   :  { %s144_s4 = scalar_lea.vmem %s36_s24, 256  ;;  %p149_p12 = scmp.lt.s32.totalorder %s36_s24, %s36_s24 }
  0x1b   :  { %p145_p11 = scmp.ne.s32.totalorder %s36_s24, %s144_s4  ;;  %p150_p13 = scmp.lt.s32.totalorder %s144_s4, %s144_s4 }
  0x1d   :  { %p151_p0 = por %p150_p13, %p149_p12 }
  0x1f   :  { %p152_p1 = pnand %p151_p0, %p145_p11 }
  0x21   :  { %155 = shalt.err (!%p152_p1)
}
  0x22   :  { %41 = dma.hbm_to_vmem [thread:$0]  %s241_s1, 256, %s36_s24, [#allocation6], %s185_s19, %s185_s19, %s186_s20  }
  0x23   :  { %178 = dma.done.wait [#allocation3], 256  }
  0x24   :  { %179 = vsyncadd [#allocation3], 4294967040 }
  0x25   :  { %180 = dma.done.wait [#allocation6], 256  }
  0x26   :  { %181 = vsyncadd [#allocation6], 4294967040  ;;  %v58_v0 = vld [vmem:[#allocation2] sm:$0xff]  ;;  %v59_v1 = vld [vmem:[#allocation2 + $0x8] sm:$0xff]  ;;  %s188_s1 = smov [#allocation7]  }
  0x27   :  { %v60_v2 = vld [vmem:[#allocation5] sm:$0xff]  ;;  %v61_v3 = vld [vmem:[#allocation5 + $0x8] sm:$0xff]  ;;  %s92_s6 = sshll.u32 %s188_s1, 4  ;;  %s93_s6 = int_to_ptr.vmem [resolvable:$true] %s92_s6 }
  0x28   :  { %v62_v4 = vsub.f32 %v58_v0, %v60_v2  ;;  %v63_v5 = vsub.f32 %v59_v1, %v61_v3  ;;  %s156_s7 = scalar_lea.vmem %s93_s6, 128  ;;  %p161_p3 = scmp.lt.s32.totalorder %s93_s6, %s93_s6 }
  0x29   :  { %p157_p2 = scmp.ne.s32.totalorder %s93_s6, %s156_s7  ;;  %p162_p4 = scmp.lt.s32.totalorder %s156_s7, %s156_s7 }
  0x2a   :  { %v64_v6 = vmul.f32 %v62_v4, %v62_v4  ;;  %v65_v7 = vmul.f32 %v63_v5, %v63_v5 }
  0x2b   :  { %p163_p5 = por %p162_p4, %p161_p3 }
  0x2c   :  { %v66_v8 = vadd.f32 1e-06, %v64_v6  ;;  %v67_v9 = vadd.f32 1e-06, %v65_v7 }
  0x2d   :  { %p164_p6 = pnand %p163_p5, %p157_p2 }
  0x2e   :  { %108 = vrsqrt.f32 %v66_v8  ;;  %vm70_vm0 = vcmp.eq.f32.partialorder %v66_v8, inf  ;;  %v73_v11 = vand.u32 2147483648, %v66_v8  ;;  %vm72_vm1 = vcmp.eq.f32.partialorder %v66_v8, 0.0 }
  0x2f   :  { %110 = vrsqrt.f32 %v67_v9  ;;  %vm77_vm2 = vcmp.eq.f32.partialorder %v67_v9, inf  ;;  %v80_v14 = vand.u32 2147483648, %v67_v9  ;;  %vm79_vm3 = vcmp.eq.f32.partialorder %v67_v9, 0.0 }
  0x38   :  { %v109_v10 = vpop.eup %108 }
  0x39   :  { %v111_v12 = vpop.eup %110  ;;  %v69_v13 = vmul.f32 %v109_v10, %v66_v8 }
  0x3a   :  { %v76_v15 = vmul.f32 %v111_v12, %v67_v9 }
  0x3b   :  { %v71_v16 = vsel %vm70_vm0, %v66_v8, %v69_v13 }
  0x3c   :  { %v74_v17 = vsel %vm72_vm1, %v73_v11, %v71_v16  ;;  %v78_v18 = vsel %vm77_vm2, %v67_v9, %v76_v15 }
  0x3d   :  { %v81_v19 = vsel %vm79_vm3, %v80_v14, %v78_v18 }
  0x3e   :  { %v82_v20 = vadd.f32 %v81_v19, %v74_v17 }
  0x40   :  { %85 = vst [vmem:[#allocation7] sm:$0xff] %v82_v20 }
  0x41   :  { %167 = shalt.err (!%p164_p6)
}
  0x42   :  { %s168_s10 = scalar_lea.hbm %s242_s2, 128 }
  0x43   :  { %p169_p7 = scmp.ne.s32.totalorder %s242_s2, %s168_s10  ;;  %p172_p8 = scmp.lt.u32.totalorder %s168_s10, %s242_s2 }
  0x45   :  { %p174_p9 = pnand %p172_p8, %p169_p7 }
  0x47   :  { %177 = shalt.err (!%p174_p9)
}
  0x48   :  { %95 = dma.vmem_to_hbm [thread:$0]  %s93_s6, 128, %s242_s2, [#allocation4]  }
  0x49   :  { %182 = dma.done.wait [#allocation4], 128  }
  0x4a   :  { %183 = vsyncadd [#allocation4], 4294967168 }
  0x4b   :  { %99 = vsyncpa [#allocation3], 1 }
  0x4c   :  { %100 = vsyncpa [#allocation6], 1 }
  0x4d   :  { %101 = vsyncpa [#allocation4], 1 }

</bundles_post_ra>
